<compile_context>
chip_gen: v7x
topology: tpu7x:2x2x1
jax: 0.10.0
libtpu: 0.0.40
codegen_flags: <defaults>
</compile_context>

<pallas_src>
import jax
import jax.numpy as jnp
from jax.experimental import pallas as pl
from jax.experimental.pallas import tpu as pltpu

LANE = 128   # lanes per vreg row
SUB = 8      # sublanes per vreg


def xor_kernel(params_ref, x_ref, o_ref):
    # x_ref: (2, TR, 128) block -- feature-major, batch dense on sublanes+lanes.
    # o_ref: (TR, 128) block    -- lane-dense unmasked stores.
    x0 = x_ref[0]                    # (TR, 128) feature 0
    x1 = x_ref[1]                    # (TR, 128) feature 1

    # params (SMEM scalars), already folded with the 0.5 tanh factors:
    # [0.5*w1_00, 0.5*w1_01, 0.5*w1_10, 0.5*w1_11, 0.5*b1_0, 0.5*b1_1,
    #  0.5*w2_0,  0.5*w2_1,  b2 + 0.5*(w2_0 + w2_1)]
    a00 = params_ref[0]
    a01 = params_ref[1]
    a10 = params_ref[2]
    a11 = params_ref[3]
    c0 = params_ref[4]
    c1 = params_ref[5]
    v0 = params_ref[6]
    v1 = params_ref[7]
    v2 = params_ref[8]

    # Half-scaled pre-activations; tanh then gives exact sigmoid after folding:
    #   sigmoid(z) = 0.5*(1 + tanh(0.5*z))
    t0 = jnp.tanh(x0 * a00 + x1 * a01 + c0)     # (TR, 128)
    t1 = jnp.tanh(x0 * a10 + x1 * a11 + c1)     # (TR, 128)

    # Second linear (folded) + ReLU, full-tile unmasked store.
    o_ref[...] = jnp.maximum(t0 * v0 + t1 * v1 + v2, 0.0)


def _fold_params(w1, b1, w2, b2):
    """Flatten all parameters into one (9,) f32 vector with the tanh folding."""
    w1 = jnp.asarray(w1, jnp.float32).reshape(2, 2)
    b1 = jnp.asarray(b1, jnp.float32).reshape(2)
    w2 = jnp.asarray(w2, jnp.float32).reshape(2)
    b2 = jnp.asarray(b2, jnp.float32).reshape(())
    return jnp.concatenate([
        (0.5 * w1).reshape(-1),                      # a00 a01 a10 a11
        0.5 * b1,                                    # c0 c1
        0.5 * w2,                                    # v0 v1
        (b2 + 0.5 * (w2[0] + w2[1])).reshape(1),     # v2
    ])


def xor_forward_feature_major(x_fm, w1, b1, w2, b2, row_tile=2048):
    """x_fm: (2, B) feature-major float input -> (B, 1) float32.

    Preferred entry point: only free reshapes / padding at the boundary
    (no transpose). `row_tile` = batch rows (of 128 samples) per grid step.
    """
    x_fm = jnp.asarray(x_fm, jnp.float32)
    B = x_fm.shape[1]
    params = _fold_params(w1, b1, w2, b2)            # (9,) f32 -> SMEM

    # Row/tile geometry: rows of 128 samples, tiles a multiple of 8 sublanes.
    R = pl.cdiv(B, LANE)
    TR = min(int(row_tile), R)
    TR = pl.cdiv(TR, SUB) * SUB                      # multiple of 8
    R_pad = pl.cdiv(R, TR) * TR
    B_pad = R_pad * LANE

    if B_pad != B:
        x_fm = jnp.pad(x_fm, ((0, 0), (0, B_pad - B)))
    x_slabs = x_fm.reshape(2, R_pad, LANE)           # free metadata reshape

    out_slabs = pl.pallas_call(
        xor_kernel,
        out_shape=jax.ShapeDtypeStruct((R_pad, LANE), jnp.float32),
        grid=(R_pad // TR,),
        in_specs=[
            pl.BlockSpec(memory_space=pltpu.SMEM),               # params (9,)
            pl.BlockSpec((2, TR, LANE), lambda r: (0, r, 0)),    # x slabs
        ],
        out_specs=pl.BlockSpec((TR, LANE), lambda r: (r, 0)),
        compiler_params=pltpu.CompilerParams(
            dimension_semantics=("parallel",)),                  # v7x megacore
    )(params, x_slabs)

    # Contiguous reshape + slice off batch padding (cheap boundary ops).
    return out_slabs.reshape(B_pad)[:B].reshape(B, 1)


def xor_forward(x, w1, b1, w2, b2, row_tile=2048):
    """x: (B, 2) float (PyTorch layout) -> (B, 1) float32.

    Compatibility wrapper: does ONE boundary transpose to feature-major.
    Large-B callers should keep data feature-major and call
    `xor_forward_feature_major` directly to avoid the extra HBM pass.
    """
    return xor_forward_feature_major(jnp.asarray(x, jnp.float32).T,
                                     w1, b1, w2, b2, row_tile=row_tile)


if __name__ == "__main__":
    key = jax.random.PRNGKey(0)
    k_x, k_w1, k_b1, k_w2, k_b2, k_x2 = jax.random.split(key, 6)

    # Deterministic parameters (PyTorch nn.Linear shapes: (out, in) / (out,)).
    w1 = jax.random.normal(k_w1, (2, 2), dtype=jnp.float32) * 0.5   # linear1.weight
    b1 = jax.random.normal(k_b1, (2,), dtype=jnp.float32) * 0.1     # linear1.bias
    w2 = jax.random.normal(k_w2, (1, 2), dtype=jnp.float32) * 0.5   # linear2.weight
    b2 = jax.random.normal(k_b2, (1,), dtype=jnp.float32) * 0.1     # linear2.bias

    def ref_forward(xbt):  # pure-JAX reference, PyTorch (B, 2) layout
        h = jax.nn.sigmoid(jnp.dot(xbt, w1.T) + b1)
        return jnp.maximum(jnp.dot(h, w2.T) + b2, 0.0)

    # 1) Demo-scale batch through the PyTorch-layout wrapper (single grid step).
    B = 8
    x = jax.random.uniform(k_x, (B, 2), dtype=jnp.float32)
    out = jax.block_until_ready(xor_forward(x, w1, b1, w2, b2))
    assert out.shape == (B, 1)
    assert jnp.allclose(out, ref_forward(x), atol=1e-4, rtol=1e-4), \
        "mismatch vs reference (demo batch)"

    # 2) Feature-major path with a multi-step "parallel" batch grid
    #    (exercises the row tiling / megacore sharding path).
    B2 = 2048
    x_fm = jax.random.uniform(k_x2, (2, B2), dtype=jnp.float32)
    out2 = jax.block_until_ready(
        xor_forward_feature_major(x_fm, w1, b1, w2, b2, row_tile=8))
    assert out2.shape == (B2, 1)
    assert jnp.allclose(out2, ref_forward(x_fm.T), atol=1e-4, rtol=1e-4), \
        "mismatch vs reference (gridded batch)"

    print("KERNEL_OK")
</pallas_src>

<mosaic_0001>
module attributes {stable_mosaic.version = 11 : i64} {
  func.func @xor_kernel(%arg0: i32, %arg1: memref<9xf32, #tpu.memory_space<smem>>, %arg2: memref<2x8x128xf32, #tpu.memory_space<vmem>>, %arg3: memref<8x128xf32, #tpu.memory_space<vmem>>) attributes {dimension_semantics = [#tpu.dimension_semantics<parallel>], iteration_bounds = array<i64: 1>, scalar_prefetch = 0 : i64, scratch_operands = 0 : i64, tpu.core_type = #tpu.core_type<tc>, window_params = [{transform_indices = @transform_0, window_bounds = array<i64: 9>}, {transform_indices = @transform_1, window_bounds = array<i64: 2, 8, 128>}, {transform_indices = @transform_2, window_bounds = array<i64: 8, 128>}]} {
    %c0 = arith.constant 0 : index
    %c0_0 = arith.constant 0 : index
    %c0_1 = arith.constant 0 : index
    %0 = vector.load %arg2[%c0, %c0_0, %c0_1] : memref<2x8x128xf32, #tpu.memory_space<vmem>>, vector<1x8x128xf32>
    %1 = vector.shape_cast %0 : vector<1x8x128xf32> to vector<8x128xf32>
    %c1 = arith.constant 1 : index
    %c0_2 = arith.constant 0 : index
    %c0_3 = arith.constant 0 : index
    %2 = vector.load %arg2[%c1, %c0_2, %c0_3] : memref<2x8x128xf32, #tpu.memory_space<vmem>>, vector<1x8x128xf32>
    %3 = vector.shape_cast %2 : vector<1x8x128xf32> to vector<8x128xf32>
    %c0_4 = arith.constant 0 : index
    %4 = memref.load %arg1[%c0_4] : memref<9xf32, #tpu.memory_space<smem>>
    %c1_5 = arith.constant 1 : index
    %5 = memref.load %arg1[%c1_5] : memref<9xf32, #tpu.memory_space<smem>>
    %c2 = arith.constant 2 : index
    %6 = memref.load %arg1[%c2] : memref<9xf32, #tpu.memory_space<smem>>
    %c3 = arith.constant 3 : index
    %7 = memref.load %arg1[%c3] : memref<9xf32, #tpu.memory_space<smem>>
    %c4 = arith.constant 4 : index
    %8 = memref.load %arg1[%c4] : memref<9xf32, #tpu.memory_space<smem>>
    %c5 = arith.constant 5 : index
    %9 = memref.load %arg1[%c5] : memref<9xf32, #tpu.memory_space<smem>>
    %c6 = arith.constant 6 : index
    %10 = memref.load %arg1[%c6] : memref<9xf32, #tpu.memory_space<smem>>
    %c7 = arith.constant 7 : index
    %11 = memref.load %arg1[%c7] : memref<9xf32, #tpu.memory_space<smem>>
    %c8 = arith.constant 8 : index
    %12 = memref.load %arg1[%c8] : memref<9xf32, #tpu.memory_space<smem>>
    %13 = vector.broadcast %4 : f32 to vector<8x128xf32>
    %14 = arith.mulf %1, %13 : vector<8x128xf32>
    %15 = vector.broadcast %5 : f32 to vector<8x128xf32>
    %16 = arith.mulf %3, %15 : vector<8x128xf32>
    %17 = arith.addf %14, %16 : vector<8x128xf32>
    %18 = vector.broadcast %8 : f32 to vector<8x128xf32>
    %19 = arith.addf %17, %18 : vector<8x128xf32>
    %20 = math.tanh %19 : vector<8x128xf32>
    %21 = vector.broadcast %6 : f32 to vector<8x128xf32>
    %22 = arith.mulf %1, %21 : vector<8x128xf32>
    %23 = vector.broadcast %7 : f32 to vector<8x128xf32>
    %24 = arith.mulf %3, %23 : vector<8x128xf32>
    %25 = arith.addf %22, %24 : vector<8x128xf32>
    %26 = vector.broadcast %9 : f32 to vector<8x128xf32>
    %27 = arith.addf %25, %26 : vector<8x128xf32>
    %28 = math.tanh %27 : vector<8x128xf32>
    %29 = vector.broadcast %10 : f32 to vector<8x128xf32>
    %30 = arith.mulf %20, %29 : vector<8x128xf32>
    %31 = vector.broadcast %11 : f32 to vector<8x128xf32>
    %32 = arith.mulf %28, %31 : vector<8x128xf32>
    %33 = arith.addf %30, %32 : vector<8x128xf32>
    %34 = vector.broadcast %12 : f32 to vector<8x128xf32>
    %35 = arith.addf %33, %34 : vector<8x128xf32>
    %cst = arith.constant 0.000000e+00 : f32
    %36 = vector.broadcast %cst : f32 to vector<8x128xf32>
    %37 = arith.maximumf %35, %36 : vector<8x128xf32>
    %c0_6 = arith.constant 0 : index
    %c0_7 = arith.constant 0 : index
    %38 = vector.load %arg3[%c0_6, %c0_7] : memref<8x128xf32, #tpu.memory_space<vmem>>, vector<8x128xf32>
    tpu.vector_store %arg3[%c0_6, %c0_7], %37 {strides = array<i32>} : memref<8x128xf32, #tpu.memory_space<vmem>>, vector<8x128xf32>,
    return
  }
  func.func @transform_0(%arg0: i32) -> i32 {
    %c0_i32 = arith.constant 0 : i32
    %c0_i32_0 = arith.constant 0 : i32
    return %c0_i32 : i32
  }
  func.func @transform_1(%arg0: i32) -> (i32, i32, i32) {
    %c0_i32 = arith.constant 0 : i32
    %c0_i32_0 = arith.constant 0 : i32
    %c0_i32_1 = arith.constant 0 : i32
    return %c0_i32, %arg0, %c0_i32_0 : i32, i32, i32
  }
  func.func @transform_2(%arg0: i32) -> (i32, i32) {
    %c0_i32 = arith.constant 0 : i32
    %c0_i32_0 = arith.constant 0 : i32
    return %arg0, %c0_i32 : i32, i32
  }
}

</mosaic_0001>

<bundles_post_ra>
// kernel: tpu_custom_call.1
= control target key start
LH: loop header
LB: loop body
LE: loop exit
PB: predicated region body
PF: predicated region fallthrough
CT: control target
= control target key end

     0   :  { %7 = vsyncpa [#allocation5], 0  ;;  %s223_s0 = inlined_call_operand.hbm [shape: f32[9], index: 0, kind: input, shape index: {}]   ;;  %s224_s1 = inlined_call_operand.hbm [shape: f32[2,8,128], index: 1, kind: input, shape index: {}]   ;;  %s225_s2 = inlined_call_operand.hbm [shape: f32[8,128], index: 2, kind: output, shape index: {}]  }
   0x1   :  { %8 = vsyncpa [#allocation3], 0 }
   0x2   :  { %9 = vsyncpa [#allocation4], 0  ;;  %s107_s11 = scalar_lea.hbm %s223_s0, 16 }
   0x3   :  { %p108_p0 = scmp.ne.s32.totalorder %s223_s0, %s107_s11  ;;  %p111_p1 = scmp.lt.u32.totalorder %s107_s11, %s223_s0 }
   0x5   :  { %p113_p2 = pnand %p111_p1, %p108_p0 }
   0x7   :  { %116 = shalt.err (!%p113_p2)
}
   0x8   :  { %s167_s16 = smov [#allocation2]   ;;  %s168_s19 = smov [#allocation6]  }
   0x9   :  { %17 = dma.hbm_to_smem %s223_s0, 16, %s167_s16, [#allocation5]  }
   0xa   :  { %s23_s20 = sshll.u32 %s168_s19, 4  ;;  %s117_s23 = scalar_lea.hbm %s224_s1, 256  ;;  %s24_s20 = int_to_ptr.vmem [resolvable:$true] %s23_s20 }
   0xb   :  { %p118_p3 = scmp.ne.s32.totalorder %s224_s1, %s117_s23  ;;  %p121_p4 = scmp.lt.u32.totalorder %s117_s23, %s224_s1 }
   0xd   :  { %p123_p5 = pnand %p121_p4, %p118_p3 }
   0xf   :  { %126 = shalt.err (!%p123_p5)
}
  0x10   :  { %s127_s28 = scalar_lea.vmem %s24_s20, 256  ;;  %p132_p7 = scmp.lt.s32.totalorder %s24_s20, %s24_s20 }
  0x11   :  { %p128_p6 = scmp.ne.s32.totalorder %s24_s20, %s127_s28  ;;  %p133_p8 = scmp.lt.s32.totalorder %s127_s28, %s127_s28 }
  0x13   :  { %p134_p9 = por %p133_p8, %p132_p7 }
  0x15   :  { %p135_p10 = pnand %p134_p9, %p128_p6 }
  0x17   :  { %138 = shalt.err (!%p135_p10)
}
  0x18   :  { %s169_s0 = smov 128   ;;  %s170_s29 = smov 8  }
  0x19   :  { %29 = dma.hbm_to_vmem [thread:$0]  %s224_s1, 256, %s24_s20, [#allocation3], %s169_s0, %s169_s0, %s170_s29  }
  0x1a   :  { %161 = dma.done.wait [#allocation5], 16  }
  0x1b   :  { %162 = vsyncadd [#allocation5], 4294967280 }
  0x1c   :  { %163 = dma.done.wait [#allocation3], 256  }
  0x1d   :  { %164 = vsyncadd [#allocation3], 4294967040 }
  0x1e   :  { %36 = sfence }
  0x1f   :  { %s40_s4 = sld [smem:[#allocation2]]  ;;  %s90_s5 = sld [smem:[#allocation2 + $0x1]]  ;;  %v37_v0 = vld [vmem:[#allocation6] sm:$0xff]  ;;  %v39_v1 = vld [vmem:[#allocation6 + $0x8] sm:$0xff] }
  0x20   :  { %s91_s6 = sld [smem:[#allocation2 + $0x2]]  ;;  %s92_s7 = sld [smem:[#allocation2 + $0x3]] }
  0x21   :  { %s93_s8 = sld [smem:[#allocation2 + $0x4]]  ;;  %s94_s9 = sld [smem:[#allocation2 + $0x5]] }
  0x22   :  { %s95_s1 = sld [smem:[#allocation2 + $0x6]]  ;;  %s96_s10 = sld [smem:[#allocation2 + $0x7]] }
  0x23   :  { %s97_s11 = sld [smem:[#allocation2 + $0x8]]  ;;  %s171_s12 = smov [#allocation7]  }
  0x24   :  { %s80_s13 = sshll.u32 %s171_s12, 4  ;;  %s81_s13 = int_to_ptr.vmem [resolvable:$true] %s80_s13 }
  0x25   :  { %v49_v2 = vstv %s40_s4  ;;  %v51_v3 = vstv %s90_s5  ;;  %s139_s14 = scalar_lea.vmem %s81_s13, 128  ;;  %p144_p12 = scmp.lt.s32.totalorder %s81_s13, %s81_s13 }
  0x26   :  { %v50_v4 = vmul.f32 %v49_v2, %v37_v0  ;;  %v52_v5 = vmul.f32 %v51_v3, %v39_v1  ;;  %v57_v6 = vstv %s91_s6  ;;  %v59_v7 = vstv %s92_s7  ;;  %p140_p11 = scmp.ne.s32.totalorder %s81_s13, %s139_s14  ;;  %p145_p13 = scmp.lt.s32.totalorder %s139_s14, %s139_s14 }
  0x27   :  { %v54_v8 = vstv %s93_s8  ;;  %v58_v9 = vmul.f32 %v57_v6, %v37_v0  ;;  %v60_v10 = vmul.f32 %v59_v7, %v39_v1  ;;  %v62_v12 = vstv %s94_s9 }
  0x28   :  { %v53_v11 = vadd.f32 %v52_v5, %v50_v4  ;;  %v65_v16 = vstv %s95_s1  ;;  %v67_v17 = vstv %s96_s10  ;;  %p146_p0 = por %p145_p13, %p144_p12 }
  0x29   :  { %v61_v13 = vadd.f32 %v60_v10, %v58_v9  ;;  %v70_v22 = vstv %s97_s11 }
  0x2a   :  { %v55_v14 = vadd.f32 %v54_v8, %v53_v11  ;;  %p147_p1 = pnand %p146_p0, %p140_p11 }
  0x2b   :  { %v63_v15 = vadd.f32 %v62_v12, %v61_v13 }
  0x2c   :  { %103 = vtanh.f32 %v55_v14 }
  0x2d   :  { %105 = vtanh.f32 %v63_v15 }
  0x36   :  { %v104_v18 = vpop.eup %103 }
  0x37   :  { %v106_v19 = vpop.eup %105  ;;  %v66_v20 = vmul.f32 %v104_v18, %v65_v16 }
  0x38   :  { %v68_v21 = vmul.f32 %v106_v19, %v67_v17 }
  0x3a   :  { %v69_v23 = vadd.f32 %v68_v21, %v66_v20 }
  0x3c   :  { %v71_v24 = vadd.f32 %v70_v22, %v69_v23 }
  0x3e   :  { %v72_v25 = vmax.f32 %v71_v24, 0.0 }
  0x40   :  { %73 = vst [vmem:[#allocation7] sm:$0xff] %v72_v25 }
  0x41   :  { %150 = shalt.err (!%p147_p1)
}
  0x42   :  { %s151_s17 = scalar_lea.hbm %s225_s2, 128 }
  0x43   :  { %p152_p2 = scmp.ne.s32.totalorder %s225_s2, %s151_s17  ;;  %p155_p3 = scmp.lt.u32.totalorder %s151_s17, %s225_s2 }
  0x45   :  { %p157_p4 = pnand %p155_p3, %p152_p2 }
  0x47   :  { %160 = shalt.err (!%p157_p4)
}
  0x48   :  { %83 = dma.vmem_to_hbm [thread:$0]  %s81_s13, 128, %s225_s2, [#allocation4]  }
  0x49   :  { %165 = dma.done.wait [#allocation4], 128  }
  0x4a   :  { %166 = vsyncadd [#allocation4], 4294967168 }
  0x4b   :  { %87 = vsyncpa [#allocation3], 1 }
  0x4c   :  { %88 = vsyncpa [#allocation4], 1 }
  0x4d   :  { %89 = vsyncpa [#allocation5], 1 }

</bundles_post_ra>
